<compile_context>
chip_gen: v5e
topology: v5e:2x2
jax: 0.10.0
libtpu: 0.0.40
codegen_flags: <defaults>
</compile_context>

<pallas_src>
import functools

import jax
import jax.numpy as jnp
from jax.experimental import pallas as pl
from jax.experimental.pallas import tpu as pltpu

LANES = 128
SUBLANES = 8
MAX_BLOCK_ROWS = 2048  # 2048 * 128 * 4B = 1 MiB per input tile


def _soft_bce_kernel(p_ref, t_ref, out_ref, acc_ref, *,
                     smooth_factor, inv_count, n_elems,
                     block_rows, blocks_per_core, needs_mask):
    i = pl.program_id(1)  # reduction ("arbitrary") axis

    @pl.when(i == 0)
    def _():
        acc_ref[...] = jnp.zeros_like(acc_ref)

    p = p_ref[...].astype(jnp.float32)
    t = t_ref[...].astype(jnp.float32)

    # label smoothing folded to a single FMA:  t' = s + t*(1 - 2s)
    if smooth_factor is not None:
        s = float(smooth_factor)
        t = jnp.float32(s) + t * jnp.float32(1.0 - 2.0 * s)

    # F.binary_cross_entropy clamps the log terms at -100 (PyTorch semantics)
    log_p = jnp.maximum(jnp.log(p), jnp.float32(-100.0))
    log_1mp = jnp.maximum(jnp.log(1.0 - p), jnp.float32(-100.0))
    loss = -(t * log_p + (1.0 - t) * log_1mp)

    if needs_mask:
        # zero out padded / out-of-range tail elements (static Python gate;
        # cheap VPU/iota work fully hidden under the input DMAs)
        blk = pl.program_id(0) * blocks_per_core + i
        row = jax.lax.broadcasted_iota(jnp.int32, (block_rows, LANES), 0)
        lane = jax.lax.broadcasted_iota(jnp.int32, (block_rows, LANES), 1)
        grow = blk * block_rows + row
        n_full_rows = n_elems // LANES
        rem = n_elems % LANES
        valid = grow < n_full_rows
        if rem:
            valid = valid | ((grow == n_full_rows) & (lane < rem))
        loss = jnp.where(valid, loss, jnp.float32(0.0))

    # partial reduce to one vreg: only cheap VPU adds on the carried dependency
    acc_ref[...] += jnp.sum(
        loss.reshape(block_rows // SUBLANES, SUBLANES, LANES), axis=0)

    # full cross-lane/sublane reduce + mean scale only on the last step
    @pl.when(i == pl.num_programs(1) - 1)
    def _():
        out_ref[...] = (jnp.sum(acc_ref[...]) * jnp.float32(inv_count)).reshape(1, 1)


def soft_bce_loss(y_pred, y_true, smooth_factor=None):
    """Pallas-TPU SoftBCELoss forward. Returns a scalar float32."""
    assert y_pred.shape == y_true.shape
    n_elems = y_pred.size

    # keep original dtypes (bf16 halves HBM traffic); kernel upcasts to f32.
    p = jnp.ravel(y_pred)
    t = jnp.ravel(y_true)

    # Only pad (at most 1023 elems) when n_elems isn't a multiple of 8*128;
    # padded elements are zeroed by the in-kernel mask, so smoothing is safe.
    tile_elems = SUBLANES * LANES
    padded = pl.cdiv(n_elems, tile_elems) * tile_elems
    pad = padded - n_elems
    if pad:
        p = jnp.pad(p, (0, pad))
        t = jnp.pad(t, (0, pad))

    rows = padded // LANES  # multiple of 8
    p2 = p.reshape(rows, LANES)
    t2 = t.reshape(rows, LANES)

    block_rows = min(MAX_BLOCK_ROWS, rows)  # multiple of 8
    n_blocks = pl.cdiv(rows, block_rows)
    n_cores = 2 if n_blocks >= 2 else 1     # v7x: one slice per TensorCore
    bpc = pl.cdiv(n_blocks, n_cores)
    needs_clamp = n_cores * bpc > n_blocks
    needs_mask = (n_cores * bpc * block_rows * LANES) != n_elems

    def in_map(c, i):
        blk = c * bpc + i
        if needs_clamp:
            # keep the DMA in-bounds; the duplicated block is masked to zero
            blk = jnp.minimum(blk, n_blocks - 1)
        return (blk, 0)

    kernel = functools.partial(
        _soft_bce_kernel,
        smooth_factor=smooth_factor,
        inv_count=1.0 / float(n_elems),
        n_elems=n_elems,
        block_rows=block_rows,
        blocks_per_core=bpc,
        needs_mask=needs_mask,
    )

    bytes_accessed = (int(p2.size) * p2.dtype.itemsize
                      + int(t2.size) * t2.dtype.itemsize
                      + 4 * n_cores)

    partials = pl.pallas_call(
        kernel,
        out_shape=jax.ShapeDtypeStruct((n_cores, 1), jnp.float32),
        grid_spec=pltpu.PrefetchScalarGridSpec(
            num_scalar_prefetch=0,
            grid=(n_cores, bpc),
            in_specs=[
                pl.BlockSpec((block_rows, LANES), in_map),
                pl.BlockSpec((block_rows, LANES), in_map),
            ],
            out_specs=pl.BlockSpec((1, 1), lambda c, i: (c, 0)),
            scratch_shapes=[pltpu.VMEM((SUBLANES, LANES), jnp.float32)],
        ),
        compiler_params=pltpu.CompilerParams(
            dimension_semantics=("parallel", "arbitrary"),
        ),
        cost_estimate=pl.CostEstimate(
            flops=10 * n_elems,
            transcendentals=2 * n_elems,
            bytes_accessed=bytes_accessed,
        ),
    )(p2, t2)

    # TODO(synk): tiny inputs (< ~1M elems) could dispatch to plain jnp to skip
    # the fixed pallas_call overhead; kept on the kernel path here for testing.
    return jnp.sum(partials)


def _reference(y_pred, y_true, smooth_factor=None):
    t = y_true.astype(jnp.float32)
    p = y_pred.astype(jnp.float32)
    if smooth_factor is not None:
        t = (1.0 - t) * smooth_factor + t * (1.0 - smooth_factor)
    log_p = jnp.maximum(jnp.log(p), -100.0)
    log_1mp = jnp.maximum(jnp.log(1.0 - p), -100.0)
    return jnp.mean(-(t * log_p + (1.0 - t) * log_1mp))


if __name__ == "__main__":
    key = jax.random.PRNGKey(0)
    k1, k2, k3, k4 = jax.random.split(key, 4)

    # NCHW, small shapes: batch=2, channels=4, spatial=16x16 (lane-aligned)
    shape = (2, 4, 16, 16)
    # predictions must be probabilities in (0, 1) for binary_cross_entropy
    y_pred = jax.nn.sigmoid(jax.random.normal(k1, shape, dtype=jnp.float32))
    y_true = (jax.random.uniform(k2, shape) > 0.5).astype(jnp.float32)

    smooth = 0.1  # module's optional smooth_factor

    loss = soft_bce_loss(y_pred, y_true, smooth_factor=smooth)
    jax.block_until_ready(loss)
    ref = _reference(y_pred, y_true, smooth_factor=smooth)
    assert jnp.allclose(loss, ref, atol=1e-5, rtol=1e-5), (loss, ref)

    # no-smoothing path
    loss2 = soft_bce_loss(y_pred, y_true, smooth_factor=None)
    jax.block_until_ready(loss2)
    ref2 = _reference(y_pred, y_true, smooth_factor=None)
    assert jnp.allclose(loss2, ref2, atol=1e-5, rtol=1e-5), (loss2, ref2)

    # ragged element count (1440): exercises in-kernel tail masking + smoothing
    shape3 = (2, 3, 15, 16)
    y_pred3 = jax.nn.sigmoid(jax.random.normal(k3, shape3, dtype=jnp.float32))
    y_true3 = (jax.random.uniform(k4, shape3) > 0.5).astype(jnp.float32)
    loss3 = soft_bce_loss(y_pred3, y_true3, smooth_factor=smooth)
    jax.block_until_ready(loss3)
    ref3 = _reference(y_pred3, y_true3, smooth_factor=smooth)
    assert jnp.allclose(loss3, ref3, atol=1e-5, rtol=1e-5), (loss3, ref3)

    print("KERNEL_OK")
</pallas_src>

<mosaic_0001>
module attributes {stable_mosaic.version = 11 : i64} {
  func.func @_soft_bce_kernel(%arg0: i32, %arg1: i32, %arg2: memref<16x128xf32, #tpu.memory_space<vmem>>, %arg3: memref<16x128xf32, #tpu.memory_space<vmem>>, %arg4: memref<1x1xf32, #tpu.memory_space<vmem>>, %arg5: memref<8x128xf32, #tpu.memory_space<vmem>>) attributes {dimension_semantics = [#tpu.dimension_semantics<parallel>, #tpu.dimension_semantics<arbitrary>], iteration_bounds = array<i64: 1, 1>, scalar_prefetch = 0 : i64, scratch_operands = 1 : i64, tpu.core_type = #tpu.core_type<tc>, window_params = [{transform_indices = @transform_0, window_bounds = array<i64: 16, 128>}, {transform_indices = @transform_1, window_bounds = array<i64: 16, 128>}, {transform_indices = @transform_2, window_bounds = array<i64: 1, 1>}]} {
    %c0_i32 = arith.constant 0 : i32
    %0 = arith.cmpi eq, %arg1, %c0_i32 : i32
    %1 = arith.extui %0 : i1 to i32
    %c0_i32_0 = arith.constant 0 : i32
    %2 = arith.cmpi ne, %1, %c0_i32_0 : i32
    scf.if %2 {
      %cst_17 = arith.constant 0.000000e+00 : f32
      %32 = vector.broadcast %cst_17 : f32 to vector<8x128xf32>
      %c0_18 = arith.constant 0 : index
      %c0_19 = arith.constant 0 : index
      %33 = vector.load %arg5[%c0_18, %c0_19] : memref<8x128xf32, #tpu.memory_space<vmem>>, vector<8x128xf32>
      tpu.vector_store %arg5[%c0_18, %c0_19], %32 {strides = array<i32>} : memref<8x128xf32, #tpu.memory_space<vmem>>, vector<8x128xf32>,
    } else {
    }
    %c0 = arith.constant 0 : index
    %c0_1 = arith.constant 0 : index
    %3 = vector.load %arg2[%c0, %c0_1] : memref<16x128xf32, #tpu.memory_space<vmem>>, vector<16x128xf32>
    %c0_2 = arith.constant 0 : index
    %c0_3 = arith.constant 0 : index
    %4 = vector.load %arg3[%c0_2, %c0_3] : memref<16x128xf32, #tpu.memory_space<vmem>>, vector<16x128xf32>
    %cst = arith.constant 8.000000e-01 : f32
    %5 = vector.broadcast %cst : f32 to vector<16x128xf32>
    %6 = arith.mulf %4, %5 : vector<16x128xf32>
    %cst_4 = arith.constant 1.000000e-01 : f32
    %7 = vector.broadcast %cst_4 : f32 to vector<16x128xf32>
    %8 = arith.addf %7, %6 : vector<16x128xf32>
    %9 = math.log %3 : vector<16x128xf32>
    %cst_5 = arith.constant -1.000000e+02 : f32
    %10 = vector.broadcast %cst_5 : f32 to vector<16x128xf32>
    %11 = arith.maximumf %9, %10 : vector<16x128xf32>
    %cst_6 = arith.constant 1.000000e+00 : f32
    %12 = vector.broadcast %cst_6 : f32 to vector<16x128xf32>
    %13 = arith.subf %12, %3 : vector<16x128xf32>
    %14 = math.log %13 : vector<16x128xf32>
    %cst_7 = arith.constant -1.000000e+02 : f32
    %15 = vector.broadcast %cst_7 : f32 to vector<16x128xf32>
    %16 = arith.maximumf %14, %15 : vector<16x128xf32>
    %17 = arith.mulf %8, %11 : vector<16x128xf32>
    %cst_8 = arith.constant 1.000000e+00 : f32
    %18 = vector.broadcast %cst_8 : f32 to vector<16x128xf32>
    %19 = arith.subf %18, %8 : vector<16x128xf32>
    %20 = arith.mulf %19, %16 : vector<16x128xf32>
    %21 = arith.addf %17, %20 : vector<16x128xf32>
    %cst_9 = arith.constant 0.000000e+00 : f32
    %22 = vector.broadcast %cst_9 : f32 to vector<16x128xf32>
    %23 = arith.subf %22, %21 : vector<16x128xf32>
    %c0_10 = arith.constant 0 : index
    %c0_11 = arith.constant 0 : index
    %24 = vector.load %arg5[%c0_10, %c0_11] : memref<8x128xf32, #tpu.memory_space<vmem>>, vector<8x128xf32>
    %25 = vector.shape_cast %23 : vector<16x128xf32> to vector<2x8x128xf32>
    %cst_12 = arith.constant dense<0.000000e+00> : vector<8x128xf32>
    %26 = vector.multi_reduction <add>, %25, %cst_12 [0] : vector<2x8x128xf32> to vector<8x128xf32>
    %27 = arith.addf %24, %26 : vector<8x128xf32>
    %c0_13 = arith.constant 0 : index
    %c0_14 = arith.constant 0 : index
    %28 = vector.load %arg5[%c0_13, %c0_14] : memref<8x128xf32, #tpu.memory_space<vmem>>, vector<8x128xf32>
    tpu.vector_store %arg5[%c0_13, %c0_14], %27 {strides = array<i32>} : memref<8x128xf32, #tpu.memory_space<vmem>>, vector<8x128xf32>,
    %c0_i32_15 = arith.constant 0 : i32
    %29 = arith.cmpi eq, %arg1, %c0_i32_15 : i32
    %30 = arith.extui %29 : i1 to i32
    %c0_i32_16 = arith.constant 0 : i32
    %31 = arith.cmpi ne, %30, %c0_i32_16 : i32
    scf.if %31 {
      %c0_17 = arith.constant 0 : index
      %c0_18 = arith.constant 0 : index
      %32 = vector.load %arg5[%c0_17, %c0_18] : memref<8x128xf32, #tpu.memory_space<vmem>>, vector<8x128xf32>
      %33 = vector.shape_cast %32 : vector<8x128xf32> to vector<1x8x128xf32>
      %cst_19 = arith.constant dense<0.000000e+00> : vector<1xf32>
      %34 = vector.multi_reduction <add>, %33, %cst_19 [1, 2] : vector<1x8x128xf32> to vector<1xf32>
      %35 = vector.shape_cast %34 : vector<1xf32> to vector<1x1x1xf32>
      %36 = vector.extract %35[0, 0, 0] : f32 from vector<1x1x1xf32>
      %cst_20 = arith.constant 4.8828125E-4 : f32
      %37 = arith.mulf %36, %cst_20 : f32
      %38 = vector.broadcast %37 : f32 to vector<1x1xf32>
      %c0_21 = arith.constant 0 : index
      %c0_22 = arith.constant 0 : index
      %39 = vector.load %arg4[%c0_21, %c0_22] : memref<1x1xf32, #tpu.memory_space<vmem>>, vector<1x1xf32>
      tpu.vector_store %arg4[%c0_21, %c0_22], %38 {strides = array<i32>} : memref<1x1xf32, #tpu.memory_space<vmem>>, vector<1x1xf32>,
    } else {
    }
    return
  }
  func.func @transform_0(%arg0: i32, %arg1: i32) -> (i32, i32) {
    %c1_i32 = arith.constant 1 : i32
    %0 = arith.muli %arg0, %c1_i32 : i32
    %1 = arith.addi %0, %arg1 : i32
    %c0_i32 = arith.constant 0 : i32
    %c0_i32_0 = arith.constant 0 : i32
    return %1, %c0_i32 : i32, i32
  }
  func.func @transform_1(%arg0: i32, %arg1: i32) -> (i32, i32) {
    %c1_i32 = arith.constant 1 : i32
    %0 = arith.muli %arg0, %c1_i32 : i32
    %1 = arith.addi %0, %arg1 : i32
    %c0_i32 = arith.constant 0 : i32
    %c0_i32_0 = arith.constant 0 : i32
    return %1, %c0_i32 : i32, i32
  }
  func.func @transform_2(%arg0: i32, %arg1: i32) -> (i32, i32) {
    %c0_i32 = arith.constant 0 : i32
    %c0_i32_0 = arith.constant 0 : i32
    return %arg0, %c0_i32 : i32, i32
  }
}

</mosaic_0001>

<bundles_post_ra>
// kernel: tpu_custom_call.1
= control target key start
LH: loop header
LB: loop body
LE: loop exit
PB: predicated region body
PF: predicated region fallthrough
CT: control target
= control target key end

     0   :  { %7 = vsyncpa [#allocation4], 0  ;;  %s254_s0 = inlined_call_operand.hbm [shape: f32[16,128], index: 0, kind: input, shape index: {}]   ;;  %s255_s1 = inlined_call_operand.hbm [shape: f32[16,128], index: 1, kind: input, shape index: {}]   ;;  %s256_s2 = inlined_call_operand.hbm [shape: f32[1,1], index: 2, kind: output, shape index: {}]  }
   0x1   :  { %8 = vsyncpa [#allocation7], 0 }
   0x2   :  { %9 = vsyncpa [#allocation5], 0  ;;  %s18_s11 = sshll.u32 %s254_s0, 4  ;;  %s225_s12 = smov [#allocation3]   ;;  %s19_s11 = int_to_ptr.hbm [resolvable:$true] %s18_s11 }
   0x3   :  { %s20_s13 = sshll.u32 %s225_s12, 4  ;;  %s35_s16 = sshll.u32 %s255_s1, 4  ;;  %s21_s13 = int_to_ptr.vmem [resolvable:$true] %s20_s13  ;;  %s36_s16 = int_to_ptr.hbm [resolvable:$true] %s35_s16 }
   0x4   :  { %s226_s17 = smov 128   ;;  %s227_s18 = smov 8  }
   0x5   :  { %26 = dma.hbm_to_vmem [thread:$0]  %s19_s11, 256, %s21_s13, [#allocation4], %s226_s17, %s226_s17, %s227_s18  }
   0x6   :  { %s228_s19 = smov [#allocation6]  }
   0x7   :  { %s37_s20 = sshll.u32 %s228_s19, 4  ;;  %s38_s20 = int_to_ptr.vmem [resolvable:$true] %s37_s20 }
   0x8   :  { %43 = dma.hbm_to_vmem [thread:$0]  %s36_s16, 256, %s38_s20, [#allocation7], %s226_s17, %s226_s17, %s227_s18  }
   0x9   :  { %219 = dma.done.wait [#allocation4], 256  }
   0xa   :  { %220 = vsyncadd [#allocation4], 4294967040 }
   0xb   :  { %221 = dma.done.wait [#allocation7], 256  }
   0xc   :  { %222 = vsyncadd [#allocation7], 4294967040  ;;  %v61_v0 = vld [vmem:[#allocation3] sm:$0xff]  ;;  %v62_v1 = vld [vmem:[#allocation3 + $0x8] sm:$0xff]  ;;  %s229_s0 = smov [#allocation8]   ;;  %s121_s23 = sshll.u32 %s256_s2, 4  ;;  %s122_s23 = int_to_ptr.hbm [resolvable:$true] %s121_s23 }
   0xd   :  { %v63_v2 = vld [vmem:[#allocation6] sm:$0xff]  ;;  %v64_v3 = vld [vmem:[#allocation6 + $0x8] sm:$0xff]  ;;  %139 = vlog2.f32 %v61_v0  ;;  %v75_v4 = vsub.f32 1.0, %v61_v0  ;;  %v76_v5 = vsub.f32 1.0, %v62_v1  ;;  %s119_s1 = sshll.u32 %s229_s0, 4  ;;  %vm112_vm0 = vcmask 0   ;;  %s120_s1 = int_to_ptr.vmem [resolvable:$true] %s119_s1 }
   0xe   :  { %v65_v6 = vmul.f32 0.8, %v63_v2  ;;  %141 = vlog2.f32 %v62_v1  ;;  %v66_v7 = vmul.f32 0.8, %v64_v3 }
   0xf   :  { %143 = vlog2.f32 %v75_v4 }
  0x10   :  { %145 = vlog2.f32 %v76_v5  ;;  %v67_v8 = vadd.f32 0.1, %v65_v6  ;;  %v68_v10 = vadd.f32 0.1, %v66_v7 }
  0x12   :  { %v85_v18 = vsub.f32 1.0, %v67_v8  ;;  %v86_v21 = vsub.f32 1.0, %v68_v10 }
  0x13   :  { %v140_v9 = vpop.eup %139 }
  0x14   :  { %v142_v11 = vpop.eup %141  ;;  %v70_v12 = vmul.f32 0.6931472, %v140_v9 }
  0x15   :  { %v144_v13 = vpop.eup %143  ;;  %v72_v14 = vmul.f32 0.6931472, %v142_v11 }
  0x16   :  { %v146_v15 = vpop.eup %145  ;;  %v73_v16 = vmax.f32 %v70_v12, -100.0  ;;  %v78_v17 = vmul.f32 0.6931472, %v144_v13 }
  0x17   :  { %v74_v19 = vmax.f32 %v72_v14, -100.0  ;;  %v80_v20 = vmul.f32 0.6931472, %v146_v15 }
  0x18   :  { %v81_v22 = vmax.f32 %v78_v17, -100.0  ;;  %v83_v23 = vmul.f32 %v73_v16, %v67_v8 }
  0x19   :  { %v82_v24 = vmax.f32 %v80_v20, -100.0  ;;  %v84_v25 = vmul.f32 %v74_v19, %v68_v10 }
  0x1a   :  { %v87_v26 = vmul.f32 %v85_v18, %v81_v22 }
  0x1b   :  { %v88_v27 = vmul.f32 %v86_v21, %v82_v24 }
  0x1c   :  { %v89_v28 = vadd.f32 %v87_v26, %v83_v23 }
  0x1d   :  { %v90_v29 = vadd.f32 %v88_v27, %v84_v25 }
  0x1e   :  { %v91_v30 = vsub.f32 0.0, %v89_v28 }
  0x1f   :  { %v92_v31 = vsub.f32 0.0, %v90_v29 }
  0x21   :  { %v94_v32 = vadd.f32 %v92_v31, %v91_v30 }
  0x23   :  { %101 = vadd.xlane.f32.xlu0 %v94_v32 }
  0x96   :  { %v102_v33 = vpop.xlane.xlu0 %101 }
  0x97   :  { %v103_v34 = vrot.slane %v102_v33, 4 }
  0x99   :  { %v104_v35 = vadd.f32 %v103_v34, %v102_v33 }
  0x9b   :  { %v105_v36 = vrot.slane %v104_v35, 2 }
  0x9d   :  { %v106_v37 = vadd.f32 %v105_v36, %v104_v35 }
  0x9f   :  { %v107_v38 = vrot.slane %v106_v37, 1 }
  0xa1   :  { %v108_v39 = vadd.f32 %v107_v38, %v106_v37 }
  0xa3   :  { %132 = vpush %v108_v39 }
  0xd4   :  { %s133_s24 = spop %132 }
  0xd5   :  { %s110_s25 = smul.f32 0.00048828125, %s133_s24 }
  0xd7   :  { %v111_v40 = vstv %s110_s25 }
  0xd8   :  { %113 = vst.msk [vmem:[#allocation8] sm:$0x1] %vm112_vm0, %v111_v40 }
  0xd9   :  { %124 = dma.vmem_to_hbm [thread:$0]  %s120_s1, 16, %s122_s23, [#allocation5]  }
  0xda   :  { %223 = dma.done.wait [#allocation5], 16  }
  0xdb   :  { %224 = vsyncadd [#allocation5], 4294967280 }
  0xdc   :  { %129 = vsyncpa [#allocation4], 1 }
  0xdd   :  { %130 = vsyncpa [#allocation7], 1 }
  0xde   :  { %131 = vsyncpa [#allocation5], 1 }

</bundles_post_ra>
